<compile_context>
chip_gen: v5e
topology: v5e:2x2
jax: 0.10.0
libtpu: 0.0.40
codegen_flags: <defaults>
</compile_context>

<pallas_src>
import functools

import jax
import jax.numpy as jnp
from jax.experimental import pallas as pl
from jax.experimental.pallas import tpu as pltpu


# ----------------------------------------------------------------------------
# Chip-aware budgets
# ----------------------------------------------------------------------------
@functools.lru_cache(maxsize=1)
def _vmem_limit_bytes():
    """Scoped VMEM limit: 64 MiB on 128 MiB chips (v5e/v6e), 48 MiB on v7x."""
    cap = 64 * 1024 * 1024  # conservative default (v7x-sized physical VMEM)
    try:
        cap = int(pltpu.get_tpu_info().vmem_capacity_bytes)
    except Exception:
        pass
    return min(64 * 1024 * 1024, (cap * 3) // 4)


@functools.lru_cache(maxsize=1)
def _tensorcores_per_device():
    """2 for megacore chips (v4 / v5p / v7x), 1 for v5e / v6e."""
    try:
        kind = jax.devices()[0].device_kind.lower()
    except Exception:
        return 1
    if "lite" in kind or "v5e" in kind or "v6e" in kind:
        return 1
    if "v4" in kind or "v5p" in kind or "7x" in kind or "v7" in kind:
        return 2
    return 1


def _cparams(sem, vmem_limit):
    return pltpu.CompilerParams(dimension_semantics=sem,
                                vmem_limit_bytes=vmem_limit)


# ----------------------------------------------------------------------------
# Kernels
# ----------------------------------------------------------------------------
def _gn_fused_kernel(x_ref, gamma_ref, beta_ref, o_ref, *, eps, inv_n, act):
    """Whole-sample GroupNorm(1) + affine + optional fused elementwise act.

    x_ref: (C, hw) one sample (unpadded).  gamma_ref/beta_ref: (C, 1).
    """
    xf = x_ref[...].astype(jnp.float32)
    # One-pass statistics in f32 (var clamped against cancellation going <0).
    mean = jnp.sum(xf, keepdims=True) * inv_n                         # (1, 1)
    var = jnp.maximum(jnp.sum(xf * xf, keepdims=True) * inv_n - mean * mean, 0.0)
    inv_std = jax.lax.rsqrt(var + eps)                                # (1, 1)

    scale = gamma_ref[...].astype(jnp.float32) * inv_std              # (C, 1)
    shift = beta_ref[...].astype(jnp.float32) - mean * scale          # (C, 1)

    # Recompute the cast instead of keeping `xf` live across both phases
    # (frees a block-sized f32 temp; VMEM re-reads are cheap).
    y = x_ref[...].astype(jnp.float32) * scale + shift
    if act is not None:
        y = act(y)
    o_ref[...] = y.astype(o_ref.dtype)


def _gn_stats_kernel(x_ref, gamma_ref, beta_ref, scale_ref, shift_ref,
                     sum_ref, sumsq_ref, *, eps, inv_n, hw_true, tile_hw):
    """Tiled pass 1: accumulate sum / sumsq over HW tiles (masking the ragged
    last tile), then emit per-channel scale / shift for the sample.

    x_ref: (C, tile_hw); grid = (N, n_tiles), tile axis is a reduction.
    scale_ref / shift_ref: (C, 1), written on the last tile.
    """
    t = pl.program_id(1)

    @pl.when(t == 0)
    def _():
        sum_ref[...] = jnp.zeros_like(sum_ref)
        sumsq_ref[...] = jnp.zeros_like(sumsq_ref)

    xf = x_ref[...].astype(jnp.float32)
    if hw_true % tile_hw != 0:
        # Boundary block: out-of-bounds lanes hold unspecified data — zero
        # them so they do not perturb the statistics.
        lane = jax.lax.broadcasted_iota(jnp.int32, xf.shape, 1)
        xf = jnp.where(t * tile_hw + lane < hw_true, xf, 0.0)

    sum_ref[...] += jnp.sum(xf, keepdims=True)        # (1, 1)
    sumsq_ref[...] += jnp.sum(xf * xf, keepdims=True)

    @pl.when(t == pl.num_programs(1) - 1)
    def _():
        mean = sum_ref[...] * inv_n                                   # (1, 1)
        var = jnp.maximum(sumsq_ref[...] * inv_n - mean * mean, 0.0)
        inv_std = jax.lax.rsqrt(var + eps)
        scale = gamma_ref[...].astype(jnp.float32) * inv_std          # (C, 1)
        scale_ref[...] = scale
        shift_ref[...] = beta_ref[...].astype(jnp.float32) - mean * scale


def _gn_norm_kernel(x_ref, scale_ref, shift_ref, o_ref, *, act):
    """Tiled pass 2: y = x * scale + shift (+ fused act).  Out-of-bounds
    lanes of the boundary block are dropped by Pallas on writeback."""
    y = x_ref[...].astype(jnp.float32) * scale_ref[...] + shift_ref[...]
    if act is not None:
        y = act(y)
    o_ref[...] = y.astype(o_ref.dtype)


# ----------------------------------------------------------------------------
# Wrapper
# ----------------------------------------------------------------------------
def groupnorm1(x, gamma, beta, *, eps=1e-5, act=None, force_tiled=False,
               tile_hw=None):
    """GroupNorm(num_groups=1, num_channels=C) on NCHW `x`, optionally fused
    with an elementwise activation `act` in the kernel epilogue.

    Note: gamma/beta are promoted to float32 inside the kernel (slightly
    better numerics than a pure-bf16 PyTorch GroupNorm)."""
    N, C, H, W = x.shape
    hw = H * W
    inv_n = 1.0 / float(C * hw)   # true element count

    # Fold spatial chunks into the sublane axis for small channel counts so
    # (Cf, *) vregs use all 8 sublanes.  Contiguous reshape -> free.
    fold = 1
    if C < 8:
        for k in range(8 // C, 1, -1):
            if hw % k == 0 and (hw // k) >= 128:
                fold = k
                break
    Cf, hwf = C * fold, hw // fold

    gamma_f = jnp.repeat(gamma.reshape(C, 1).astype(jnp.float32), fold, axis=0)
    beta_f = jnp.repeat(beta.reshape(C, 1).astype(jnp.float32), fold, axis=0)
    x_flat = x.reshape(N, Cf, hwf)

    vmem_limit = _vmem_limit_bytes()
    fused_gate = vmem_limit // 8            # ~8 MiB v5e/v6e, ~6 MiB v7x
    block_f32_bytes = Cf * hwf * 4

    # Megacore (v4/v5p/v7x): a large single-sample input must take the tiled
    # path so both TensorCores get parallel grid steps (pass 2 is fully
    # parallel over (N, n_tiles)).
    need_parallel = (_tensorcores_per_device() > 1 and N == 1
                     and block_f32_bytes > (2 << 20))

    fused_ok = (not force_tiled) and (block_f32_bytes <= fused_gate) \
        and not need_parallel

    if fused_ok:
        # -------- single fused kernel: whole (Cf, hwf) sample per step ------
        out = pl.pallas_call(
            functools.partial(_gn_fused_kernel, eps=eps, inv_n=inv_n, act=act),
            out_shape=jax.ShapeDtypeStruct((N, Cf, hwf), x.dtype),
            grid_spec=pltpu.PrefetchScalarGridSpec(
                num_scalar_prefetch=0,
                grid=(N,),
                in_specs=[
                    pl.BlockSpec((None, Cf, hwf), lambda n: (n, 0, 0)),
                    pl.BlockSpec((Cf, 1), lambda n: (0, 0)),
                    pl.BlockSpec((Cf, 1), lambda n: (0, 0)),
                ],
                out_specs=pl.BlockSpec((None, Cf, hwf), lambda n: (n, 0, 0)),
            ),
            compiler_params=_cparams(("parallel",), vmem_limit),
        )(x_flat, gamma_f, beta_f)
        return out.reshape(N, C, H, W)

    # -------- tiled two-pass path (large C*HW or megacore N==1) -------------
    hw_pad128 = pl.cdiv(hwf, 128) * 128
    if tile_hw is None:
        tile_bytes_target = min(4 * 1024 * 1024, vmem_limit // 12)
        tile_hw = (tile_bytes_target // (Cf * 4)) // 128 * 128
    tile_hw = max(128, min(tile_hw, hw_pad128))
    n_tiles = pl.cdiv(hwf, tile_hw)

    # Pass 1: per-sample (scale, shift); reduction over HW tiles.
    scale, shift = pl.pallas_call(
        functools.partial(_gn_stats_kernel, eps=eps, inv_n=inv_n,
                          hw_true=hwf, tile_hw=tile_hw),
        out_shape=(jax.ShapeDtypeStruct((N, Cf, 1), jnp.float32),
                   jax.ShapeDtypeStruct((N, Cf, 1), jnp.float32)),
        grid_spec=pltpu.PrefetchScalarGridSpec(
            num_scalar_prefetch=0,
            grid=(N, n_tiles),
            in_specs=[
                pl.BlockSpec((None, Cf, tile_hw), lambda n, t: (n, 0, t)),
                pl.BlockSpec((Cf, 1), lambda n, t: (0, 0)),
                pl.BlockSpec((Cf, 1), lambda n, t: (0, 0)),
            ],
            out_specs=[
                pl.BlockSpec((None, Cf, 1), lambda n, t: (n, 0, 0)),
                pl.BlockSpec((None, Cf, 1), lambda n, t: (n, 0, 0)),
            ],
            scratch_shapes=[
                pltpu.VMEM((1, 1), jnp.float32),   # running sum
                pltpu.VMEM((1, 1), jnp.float32),   # running sum of squares
            ],
        ),
        compiler_params=_cparams(("parallel", "arbitrary"), vmem_limit),
    )(x_flat, gamma_f, beta_f)

    # Pass 2: normalize + affine (+ fused act), fully parallel grid.
    out = pl.pallas_call(
        functools.partial(_gn_norm_kernel, act=act),
        out_shape=jax.ShapeDtypeStruct((N, Cf, hwf), x.dtype),
        grid_spec=pltpu.PrefetchScalarGridSpec(
            num_scalar_prefetch=0,
            grid=(N, n_tiles),
            in_specs=[
                pl.BlockSpec((None, Cf, tile_hw), lambda n, t: (n, 0, t)),
                pl.BlockSpec((None, Cf, 1), lambda n, t: (n, 0, 0)),
                pl.BlockSpec((None, Cf, 1), lambda n, t: (n, 0, 0)),
            ],
            out_specs=pl.BlockSpec((None, Cf, tile_hw), lambda n, t: (n, 0, t)),
        ),
        compiler_params=_cparams(("parallel", "parallel"), vmem_limit),
    )(x_flat, scale, shift)

    return out.reshape(N, C, H, W)


# ----------------------------------------------------------------------------
# Module
# ----------------------------------------------------------------------------
class PreNorm:
    """JAX/Pallas equivalent of the PyTorch PreNorm module.

    forward(x) = fn(GroupNorm(1, dim)(x)),  x is NCHW.

    If `fuse_fn=True`, `fn` must be ELEMENTWISE; it is fused into the
    normalization kernel's epilogue (saves one full HBM round trip).
    Otherwise `fn` runs as ordinary JAX after the kernel (needed when fn is
    e.g. an attention / conv block).
    """

    def __init__(self, dim, fn, *, fuse_fn=False):
        # PyTorch GroupNorm default affine init: weight=1, bias=0.
        self.gamma = jnp.ones((dim,), jnp.float32)
        self.beta = jnp.zeros((dim,), jnp.float32)
        self.fn = fn
        self.fuse_fn = fuse_fn

    def __call__(self, x):
        if self.fuse_fn:
            return groupnorm1(x, self.gamma, self.beta, act=self.fn)
        return self.fn(groupnorm1(x, self.gamma, self.beta))


# ----------------------------------------------------------------------------
# Pure-JAX reference + self-test
# ----------------------------------------------------------------------------
def _groupnorm1_ref(x, gamma, beta, eps=1e-5):
    xf = x.astype(jnp.float32)
    mean = xf.mean(axis=(1, 2, 3), keepdims=True)
    var = ((xf - mean) ** 2).mean(axis=(1, 2, 3), keepdims=True)
    y = (xf - mean) * jax.lax.rsqrt(var + eps)
    return y * gamma[None, :, None, None] + beta[None, :, None, None]


if __name__ == "__main__":
    key = jax.random.PRNGKey(0)
    kx, kg, kb = jax.random.split(key, 3)

    N, C, H, W = 2, 4, 16, 16
    x = jax.random.normal(kx, (N, C, H, W), jnp.float32)

    # fn is elementwise here -> safe to fuse into the kernel epilogue.
    fn = jax.nn.gelu
    module = PreNorm(C, fn, fuse_fn=True)
    # Non-trivial affine weights (default stays 1/0, matching PyTorch init).
    module.gamma = 1.0 + 0.5 * jax.random.normal(kg, (C,), jnp.float32)
    module.beta = 0.1 * jax.random.normal(kb, (C,), jnp.float32)

    out = jax.block_until_ready(module(x))
    ref = fn(_groupnorm1_ref(x, module.gamma, module.beta))
    assert out.shape == (N, C, H, W)
    assert jnp.max(jnp.abs(out - ref)) < 1e-4

    # Exercise the tiled two-pass path (used for big samples / megacore N==1).
    out_t = jax.block_until_ready(
        groupnorm1(x, module.gamma, module.beta, act=fn, force_tiled=True))
    assert jnp.max(jnp.abs(out_t - ref)) < 1e-4

    # Non-128-aligned spatial size: fused path with ragged (masked) stores.
    H2, W2 = 12, 15   # hw = 180
    x2 = jax.random.normal(kx, (N, C, H2, W2), jnp.float32)
    out2 = jax.block_until_ready(groupnorm1(x2, module.gamma, module.beta, act=fn))
    ref2 = fn(_groupnorm1_ref(x2, module.gamma, module.beta))
    assert jnp.max(jnp.abs(out2 - ref2)) < 1e-4

    # Tiled path with a partial last tile (exercises the in-kernel iota mask
    # and multi-tile sum/sumsq accumulation): hwf=288, tile_hw=128 -> 3 tiles.
    x3 = jax.random.normal(kx, (1, C, 24, 24), jnp.float32)
    out3 = jax.block_until_ready(
        groupnorm1(x3, module.gamma, module.beta, act=fn,
                   force_tiled=True, tile_hw=128))
    ref3 = fn(_groupnorm1_ref(x3, module.gamma, module.beta))
    assert jnp.max(jnp.abs(out3 - ref3)) < 1e-4

    print("KERNEL_OK")
</pallas_src>

<mosaic_0001>
module attributes {stable_mosaic.version = 11 : i64} {
  func.func @_gn_fused_kernel(%arg0: i32, %arg1: memref<1x8x128xf32, #tpu.memory_space<vmem>>, %arg2: memref<8x1xf32, #tpu.memory_space<vmem>>, %arg3: memref<8x1xf32, #tpu.memory_space<vmem>>, %arg4: memref<1x8x128xf32, #tpu.memory_space<vmem>>) attributes {dimension_semantics = [#tpu.dimension_semantics<parallel>], iteration_bounds = array<i64: 2>, scalar_prefetch = 0 : i64, scratch_operands = 0 : i64, tpu.core_type = #tpu.core_type<tc>, window_params = [{transform_indices = @transform_0, window_bounds = array<i64: 1, 8, 128>}, {pipeline_mode = #tpu.pipeline_mode<synchronous>, transform_indices = @transform_1, window_bounds = array<i64: 8, 1>}, {pipeline_mode = #tpu.pipeline_mode<synchronous>, transform_indices = @transform_2, window_bounds = array<i64: 8, 1>}, {transform_indices = @transform_3, window_bounds = array<i64: 1, 8, 128>}]} {
    %c0 = arith.constant 0 : index
    %c0_0 = arith.constant 0 : index
    %c0_1 = arith.constant 0 : index
    %0 = vector.load %arg1[%c0, %c0_0, %c0_1] : memref<1x8x128xf32, #tpu.memory_space<vmem>>, vector<1x8x128xf32>
    %1 = vector.shape_cast %0 : vector<1x8x128xf32> to vector<8x128xf32>
    %2 = vector.shape_cast %1 : vector<8x128xf32> to vector<1x8x128xf32>
    %cst = arith.constant dense<0.000000e+00> : vector<1xf32>
    %3 = vector.multi_reduction <add>, %2, %cst [1, 2] : vector<1x8x128xf32> to vector<1xf32>
    %4 = vector.shape_cast %3 : vector<1xf32> to vector<1x1x1xf32>
    %5 = vector.extract %4[0, 0, 0] : f32 from vector<1x1x1xf32>
    %6 = vector.broadcast %5 : f32 to vector<1x1xf32>
    %cst_2 = arith.constant 9.765625E-4 : f32
    %7 = vector.broadcast %cst_2 : f32 to vector<1x1xf32>
    %8 = arith.mulf %6, %7 : vector<1x1xf32>
    %9 = arith.mulf %1, %1 : vector<8x128xf32>
    %10 = vector.shape_cast %9 : vector<8x128xf32> to vector<1x8x128xf32>
    %cst_3 = arith.constant dense<0.000000e+00> : vector<1xf32>
    %11 = vector.multi_reduction <add>, %10, %cst_3 [1, 2] : vector<1x8x128xf32> to vector<1xf32>
    %12 = vector.shape_cast %11 : vector<1xf32> to vector<1x1x1xf32>
    %13 = vector.extract %12[0, 0, 0] : f32 from vector<1x1x1xf32>
    %14 = vector.broadcast %13 : f32 to vector<1x1xf32>
    %cst_4 = arith.constant 9.765625E-4 : f32
    %15 = vector.broadcast %cst_4 : f32 to vector<1x1xf32>
    %16 = arith.mulf %14, %15 : vector<1x1xf32>
    %17 = arith.mulf %8, %8 : vector<1x1xf32>
    %18 = arith.subf %16, %17 : vector<1x1xf32>
    %cst_5 = arith.constant 0.000000e+00 : f32
    %19 = vector.broadcast %cst_5 : f32 to vector<1x1xf32>
    %20 = arith.maximumf %18, %19 : vector<1x1xf32>
    %cst_6 = arith.constant 9.99999974E-6 : f32
    %21 = vector.broadcast %cst_6 : f32 to vector<1x1xf32>
    %22 = arith.addf %20, %21 : vector<1x1xf32>
    %23 = math.rsqrt %22 : vector<1x1xf32>
    %c0_7 = arith.constant 0 : index
    %c0_8 = arith.constant 0 : index
    %24 = vector.load %arg2[%c0_7, %c0_8] : memref<8x1xf32, #tpu.memory_space<vmem>>, vector<8x1xf32>
    %25 = vector.broadcast %23 : vector<1x1xf32> to vector<8x1xf32>
    %26 = arith.mulf %24, %25 : vector<8x1xf32>
    %c0_9 = arith.constant 0 : index
    %c0_10 = arith.constant 0 : index
    %27 = vector.load %arg3[%c0_9, %c0_10] : memref<8x1xf32, #tpu.memory_space<vmem>>, vector<8x1xf32>
    %28 = vector.broadcast %8 : vector<1x1xf32> to vector<8x1xf32>
    %29 = arith.mulf %28, %26 : vector<8x1xf32>
    %30 = arith.subf %27, %29 : vector<8x1xf32>
    %c0_11 = arith.constant 0 : index
    %c0_12 = arith.constant 0 : index
    %c0_13 = arith.constant 0 : index
    %31 = vector.load %arg1[%c0_11, %c0_12, %c0_13] : memref<1x8x128xf32, #tpu.memory_space<vmem>>, vector<1x8x128xf32>
    %32 = vector.shape_cast %31 : vector<1x8x128xf32> to vector<8x128xf32>
    %33 = vector.broadcast %26 : vector<8x1xf32> to vector<8x128xf32>
    %34 = arith.mulf %32, %33 : vector<8x128xf32>
    %35 = vector.broadcast %30 : vector<8x1xf32> to vector<8x128xf32>
    %36 = arith.addf %34, %35 : vector<8x128xf32>
    %37 = arith.mulf %36, %36 : vector<8x128xf32>
    %38 = arith.mulf %36, %37 : vector<8x128xf32>
    %cst_14 = arith.constant 4.471500e-02 : f32
    %39 = vector.broadcast %cst_14 : f32 to vector<8x128xf32>
    %40 = arith.mulf %39, %38 : vector<8x128xf32>
    %41 = arith.addf %36, %40 : vector<8x128xf32>
    %cst_15 = arith.constant 0.797884583 : f32
    %42 = vector.broadcast %cst_15 : f32 to vector<8x128xf32>
    %43 = arith.mulf %42, %41 : vector<8x128xf32>
    %44 = math.tanh %43 : vector<8x128xf32>
    %cst_16 = arith.constant 1.000000e+00 : f32
    %45 = vector.broadcast %cst_16 : f32 to vector<8x128xf32>
    %46 = arith.addf %45, %44 : vector<8x128xf32>
    %cst_17 = arith.constant 5.000000e-01 : f32
    %47 = vector.broadcast %cst_17 : f32 to vector<8x128xf32>
    %48 = arith.mulf %47, %46 : vector<8x128xf32>
    %49 = arith.mulf %36, %48 : vector<8x128xf32>
    %c0_18 = arith.constant 0 : index
    %c0_19 = arith.constant 0 : index
    %c0_20 = arith.constant 0 : index
    %50 = vector.load %arg4[%c0_18, %c0_19, %c0_20] : memref<1x8x128xf32, #tpu.memory_space<vmem>>, vector<1x8x128xf32>
    %51 = vector.shape_cast %50 : vector<1x8x128xf32> to vector<8x128xf32>
    %52 = vector.shape_cast %49 : vector<8x128xf32> to vector<1x8x128xf32>
    tpu.vector_store %arg4[%c0_18, %c0_19, %c0_20], %52 {strides = array<i32>} : memref<1x8x128xf32, #tpu.memory_space<vmem>>, vector<1x8x128xf32>,
    return
  }
  func.func @transform_0(%arg0: i32) -> (i32, i32, i32) {
    %c0_i32 = arith.constant 0 : i32
    %c0_i32_0 = arith.constant 0 : i32
    %c0_i32_1 = arith.constant 0 : i32
    return %arg0, %c0_i32, %c0_i32_0 : i32, i32, i32
  }
  func.func @transform_1(%arg0: i32) -> (i32, i32) {
    %c0_i32 = arith.constant 0 : i32
    %c0_i32_0 = arith.constant 0 : i32
    %c0_i32_1 = arith.constant 0 : i32
    return %c0_i32, %c0_i32_0 : i32, i32
  }
  func.func @transform_2(%arg0: i32) -> (i32, i32) {
    %c0_i32 = arith.constant 0 : i32
    %c0_i32_0 = arith.constant 0 : i32
    %c0_i32_1 = arith.constant 0 : i32
    return %c0_i32, %c0_i32_0 : i32, i32
  }
  func.func @transform_3(%arg0: i32) -> (i32, i32, i32) {
    %c0_i32 = arith.constant 0 : i32
    %c0_i32_0 = arith.constant 0 : i32
    %c0_i32_1 = arith.constant 0 : i32
    return %arg0, %c0_i32, %c0_i32_0 : i32, i32, i32
  }
}

</mosaic_0001>

<bundles_post_ra>
// kernel: tpu_custom_call.1
= control target key start
LH: loop header
LB: loop body
LE: loop exit
PB: predicated region body
PF: predicated region fallthrough
CT: control target
= control target key end

     0   :  { %8 = vsyncpa [#allocation3], 0  ;;  %s542_s0 = inlined_call_operand.vmem [shape: f32[2,8,128], index: 0, kind: input, shape index: {}]   ;;  %s543_s1 = inlined_call_operand.vmem [shape: f32[8,1], index: 1, kind: input, shape index: {}]   ;;  %s544_s2 = inlined_call_operand.vmem [shape: f32[8,1], index: 2, kind: input, shape index: {}]   ;;  %s545_s3 = inlined_call_operand.hbm [shape: f32[2,8,128], index: 3, kind: output, shape index: {}]  }
   0x1   :  { %10 = vsyncpa [#allocation3 + $0x1], 0  ;;  %s451_s12 = smov 0   ;;  %s453_s13 = smov 0  }
   0x2   :  { %s455_s14 = smov 0   ;;  %s457_s15 = smov 0  }
   0x3 LB: > { %s472_s16 = sadd.s32 4294967295, %s428_s15   ;;  %s306_s17 = sadd.s32 4294967294, %s428_s15   ;;  %s428_s15 = sphi %s457_s15, %s551_s15   ;;  %s424_s14 = sphi %s455_s14, %s550_s14   ;;  %s420_s13 = sphi %s453_s13, %s549_s13   ;;  %s416_s12 = sphi %s451_s12, %s548_s12  }
   0x4   : > { %s476_s18 = sadd.s32 1, %s428_s15   ;;  %s91_s19 = sadd.s32 1, %s424_s14 }
   0x5   : > { %s88_s20 = ssub.s32 %s428_s15, %s476_s18  ;;  %p101_p0 = scmp.ne.s32.totalorder %s424_s14, %s420_s13 }
   0x6   : > { %p89_p1 = scmp.eq.s32.totalorder %s88_s20, 0  ;;  %p102_p2 = scmp.eq.s32.totalorder %s472_s16, 1 }
   0x7   : > { %p107_p3 = scmp.ne.s32.totalorder %s420_s13, %s416_s12  ;;  %p108_p4 = scmp.eq.s32.totalorder %s306_s17, 1 }
   0x8   : > { %s487_s21 = scalar_select %p89_p1, %s424_s14, %s91_s19  }
   0x9   : > { %p489_p5 = por %p102_p2, %p101_p0  ;;  %p493_p6 = por %p108_p4, %p107_p3 }
   0xa   : > { %p309_p7 = scmp.ge.s32.totalorder %s428_s15, 1  ;;  %p139_p8 = scmp.lt.s32.totalorder %s428_s15, 3 }
   0xc   : > { %p140_p9 = pnand %p309_p7, %p139_p8 }
   0xd   : > { %p162_p10 = scmp.lt.s32.totalorder (!%p140_p9), %s472_s16, 1  ;;  %s159_s8 = sand.u32 (!%p140_p9), 1, %s420_s13  }
   0xe   : > { %143 = sbr.rel (%p140_p9) target bundleno = 390 (0x186), region = 32  ;;  %s310_s9 = sshll.u32 (!%p140_p9), %s159_s8, 3 }
   0xf   : > { %s313_s10 = sshll.u32 (!%p140_p9), %s472_s16, 3  ;;  %s161_s20 = scalar_lea.vmem (!%p140_p9), [#allocation2], %s310_s9 }
  0x10   : > { %s242_s19 = scalar_lea.hbm (!%p140_p9), %s545_s3, %s313_s10  ;;  %s232_s26 = scalar_lea.sflag (!%p140_p9), [#allocation3], %s159_s8 }
  0x13   : > { %s163_s24 = scalar_select %p162_p10, %s472_s16, 1  ;;  %v430_v16 = vmov 0   ;;  %v204_v31 = vld [vmem:[%s543_s1] sm:$0xff] }
  0x14   : > { %360 = vset.pattern.permute.xlu1 %v430_v16  ;;  %361 = vset.pattern.permute.xlu0 %v430_v16  ;;  %v206_v35 = vld [vmem:[%s544_s2] sm:$0xff] }
  0x15   : > { %s311_s25 = sshll.u32 %s163_s24, 3  ;;  %s244_s24 = sshll.u32 %s161_s20, 4  ;;  %s245_s24 = int_to_ptr.vmem [resolvable:$true] %s244_s24 }
  0x16   : > { %s165_s28 = scalar_lea.vmem %s542_s0, %s311_s25  ;;  %s246_s25 = sshll.u32 %s242_s19, 4  ;;  %s247_s25 = int_to_ptr.hbm [resolvable:$true] %s246_s25 }
  0x17   : > { %v166_v0 = vld [vmem:[%s165_s28] sm:$0xff]  ;;  %s380_s27 = sshra.s32 %s247_s25, 4  ;;  %s381_s27 = int_to_ptr.hbm [resolvable:$true] %s380_s27 }
  0x18   : > { %167 = vadd.xlane.f32.xlu0 %v166_v0  ;;  %v178_v1 = vmul.f32 %v166_v0, %v166_v0  ;;  %s382_s28 = scalar_lea.hbm %s381_s27, 8  ;;  %p387_p0 = scmp.lt.s32.totalorder %s381_s27, %s545_s3 }
  0x19   : > { %p383_p11 = scmp.ne.s32.totalorder %s381_s27, %s382_s28 }
  0x1b   : > { %p384_p12 = pnand %p383_p11, %p489_p5 }
  0x1d   : > { %p385_p13 = pneg %p384_p12 }
  0x20   : > { %179 = vadd.xlane.f32.xlu0 %v178_v1 }
  0x8b   : > { %v168_v2 = vpop.xlane.xlu0 %167 }
  0x8c   : > { %v169_v3 = vrot.slane %v168_v2, 4 }
  0x8e   : > { %v170_v4 = vadd.f32 %v169_v3, %v168_v2 }
  0x90   : > { %v171_v5 = vrot.slane %v170_v4, 2 }
  0x92   : > { %v172_v6 = vadd.f32 %v171_v5, %v170_v4 }
  0x93   : > { %v180_v7 = vpop.xlane.xlu0 %179 }
  0x94   : > { %v181_v8 = vrot.slane %v180_v7, 4  ;;  %v173_v9 = vrot.slane %v172_v6, 1 }
  0x96   : > { %v182_v10 = vadd.f32 %v181_v8, %v180_v7  ;;  %v174_v11 = vadd.f32 %v173_v9, %v172_v6 }
  0x98   : > { %v183_v12 = vrot.slane %v182_v10, 2  ;;  %316 = vpush %v174_v11 }
  0x9a   : > { %v184_v13 = vadd.f32 %v183_v12, %v182_v10 }
  0x9c   : > { %v185_v14 = vrot.slane %v184_v13, 1 }
  0x9e   : > { %v186_v15 = vadd.f32 %v185_v14, %v184_v13 }
  0xa0   : > { %318 = vpush %v186_v15 }
  0xc9   : > { %s317_s29 = spop %316 }
  0xca   : > { %v176_v17 = vstv %s317_s29 }
  0xcb   : > { %v177_v18 = vmul.f32 0.0009765625, %v176_v17 }
  0xcd   : > { %v190_v20 = vmul.f32 %v177_v18, %v177_v18 }
  0xd1   : > { %s319_s30 = spop %318 }
  0xd2   : > { %v188_v19 = vstv %s319_s30  ;;  %s386_s30 = scalar_lea.hbm %s545_s3, 16 }
  0xd3   : > { %v189_v21 = vmul.f32 0.0009765625, %v188_v19  ;;  %p388_p1 = scmp.lt.s32.totalorder %s386_s30, %s382_s28 }
  0xd5   : > { %v191_v22 = vsub.f32 %v189_v21, %v190_v20  ;;  %p389_p2 = por %p388_p1, %p387_p0 }
  0xd7   : > { %v192_v23 = vmax.f32 %v191_v22, 0.0  ;;  %p390_p3 = pnand %p389_p2, %p385_p13 }
  0xd9   : > { %v193_v24 = vadd.f32 1e-05, %v192_v23 }
  0xdb   : > { %362 = vrsqrt.f32 %v193_v24  ;;  %vm200_vm1 = vweird.f32 %v193_v24 }
  0xe1   : > { %v363_v25 = vpop.eup %362 }
  0xe2   : > { %v195_v26 = vmul.f32 %v363_v25, %v193_v24  ;;  %vm201_vm0 = vweird.f32 %v363_v25 }
  0xe3   : > { %vm202_vm2 = vmor %vm200_vm1, %vm201_vm0 }
  0xe4   : > { %v196_v27 = vmul.f32 %v363_v25, %v195_v26 }
  0xe6   : > { %v197_v28 = vmul.f32 0.5, %v196_v27 }
  0xe8   : > { %v198_v29 = vsub.f32 1.5, %v197_v28 }
  0xea   : > { %v199_v30 = vmul.f32 %v363_v25, %v198_v29 }
  0xec   : > { %v203_v32 = vsel %vm202_vm2, %v363_v25, %v199_v30 }
  0xed   : > { %v205_v33 = vmul.f32 %v204_v31, %v203_v32 }
  0xef   : > { %211 = vperm.xlu1 %360, %v205_v33   ;;  %v207_v34 = vmul.f32 %v205_v33, %v177_v18 }
  0xf1   : > { %v208_v36 = vsub.f32 %v206_v35, %v207_v34 }
  0xf7   : > { %217 = vperm.xlu1 %360, %v208_v36  }
 0x161   : > { %v212_v37 = vpop.permute.xlu1 %211 }
 0x162   : > { %v214_v38 = vmul.f32 %v212_v37, %v166_v0 }
 0x169   : > { %v218_v39 = vpop.permute.xlu1 %217 }
 0x16a   : > { %v220_v40 = vadd.f32 %v218_v39, %v214_v38 }
 0x16c   : > { %v221_v41 = vmul.f32 %v220_v40, %v220_v40 }
 0x16e   : > { %v222_v42 = vmul.f32 %v221_v41, %v220_v40 }
 0x170   : > { %v223_v43 = vmul.f32 0.044715, %v222_v42 }
 0x172   : > { %v224_v44 = vadd.f32 %v223_v43, %v220_v40 }
 0x174   : > { %v225_v45 = vmul.f32 0.7978846, %v224_v44 }
 0x176   : > { %364 = vtanh.f32 %v225_v45 }
 0x17c   : > { %v365_v46 = vpop.eup %364 }
 0x17d   : > { %v227_v47 = vadd.f32 1.0, %v365_v46 }
 0x17f   : > { %v228_v48 = vmul.f32 0.5, %v227_v47 }
 0x181   : > { %v229_v49 = vmul.f32 %v228_v48, %v220_v40 }
 0x183   : > { %230 = vst [vmem:[%s161_s20] sm:$0xff] %v229_v49 }
 0x184   : > { %393 = shalt.err (!%p390_p3)
}
 0x185   : > { %320 = dma.vmem_to_hbm [thread:$0]  (%p489_p5), %s245_s24, 128, %s247_s25, %s232_s26  }
 0x186 PF: > { %p326_p4 = scmp.ge.s32.totalorder %s428_s15, 2  ;;  %s258_s6 = sand.u32 1, %s416_s12  }
 0x187   : > { %s259_s7 = scalar_lea.sflag [#allocation3], %s258_s6 }
 0x188   : > { %p323_p7 = pnand %p326_p4, %p493_p6 }
 0x18a   : > { %p324_p8 = pneg %p323_p7 }
 0x18c   : > { %411 = dma.done.wait (%p324_p8), %s259_s7, 128  }
 0x18d   : > { %413 = vsyncadd (%p324_p8), %s259_s7, 4294967168  ;;  %p13_p9 = scmp.ge.s32.totalorder %s476_s18, 4   ;;  %s548_s12 = smov %s420_s13 }
 0x18e   : > { %s549_s13 = smov %s424_s14  ;;  %s550_s14 = smov %s487_s21 }
 0x18f   : > { %s551_s15 = smov %s476_s18  ;;  %15 = sbr.rel (!%p13_p9) target bundleno = 3 (0x3), region = 67 }
 0x194   :  { %265 = vsyncpa [#allocation3], 1 }
 0x195   :  { %267 = vsyncpa [#allocation3 + $0x1], 1 }

</bundles_post_ra>
